<compile_context>
chip_gen: v6e
topology: v6e:2x2x1
jax: 0.10.0
libtpu: 0.0.40
codegen_flags: <defaults>
</compile_context>

<pallas_src>
import jax
import jax.numpy as jnp
from jax.experimental import pallas as pl
from jax.experimental.pallas import tpu as pltpu


# --------------------------------------------------------------------------- #
# Tiling heuristics                                                            #
# --------------------------------------------------------------------------- #
def _round_up(x, m):
    return -(-x // m) * m


def _choose_tiles(batch, num_boxes, feat, proj):
    """Pick (tile_b, cb): batch elements per grid step / per inner chunk."""
    b_pad8 = _round_up(max(batch, 1), 8)

    # Inner chunk: whole batch elements, a multiple of 8 (sublane-aligned
    # slices), >= ~256 flattened MXU rows, and f32 intermediates (pimg + tanh)
    # bounded to a few MiB. Prefer a chunk whose flattened row count hits a
    # multiple of 256 (v6e/v7x MXU width) when that fits the budget.
    # TODO(synk): for very large num_boxes * projection_size, chunk over boxes
    # with an online softmax instead of whole batch elements.
    rows_cap = max(256, (4 << 20) // (proj * 4))
    cb = _round_up(max(1, pl.cdiv(256, num_boxes)), 8)
    cand = cb
    while cand * num_boxes <= rows_cap and cand <= 512:
        if (cand * num_boxes) % 256 == 0:
            cb = cand
            break
        cand += 8
    cb = min(cb, b_pad8)

    # Outer tile: ~8 MiB of f32 image features per (double-buffered) block,
    # made of whole chunks.
    rows_target = max(cb * num_boxes, (8 << 20) // (feat * 4))
    tile_b = max(cb, (rows_target // num_boxes) // cb * cb)
    b_pad_cb = _round_up(b_pad8, cb)
    tile_b = min(tile_b, b_pad_cb)
    # v7x megacore: keep at least 2 grid steps when the batch is big enough.
    if b_pad_cb >= 2 * cb:
        tile_b = min(tile_b, max(cb, (b_pad_cb // (2 * cb)) * cb))
    return tile_b, cb


def _vmem_limit_bytes(tile_b, cb, n, f, q, p, has_mask):
    f32, bf16 = 4, 2
    streamed = 2 * tile_b * (n * f + q + n) * f32     # double-buffered in/out tiles
    if has_mask:
        streamed += 2 * tile_b * n * f32
    weights = 2 * ((q + f) * p * bf16 + p * f32)      # margin if Buffered(1) is ignored
    scratch = tile_b * p * f32                        # pq scratch
    chunk = cb * n * (f * bf16 + 4 * p * f32)         # bf16 rows + pimg/tanh/relayout
    total = streamed + weights + scratch + chunk + (8 << 20)
    try:
        cap = int(pltpu.get_tpu_info().vmem_capacity_bytes * 0.85)  # 54 MiB on v7x
    except Exception:                                 # pragma: no cover (non-TPU trace)
        cap = 48 << 20
    return int(min(max(total, 16 << 20), cap))


def _resident_spec(shape):
    """Weight spec: constant index map (VMEM-resident across the grid) and,
    when supported, single-buffered to halve the weight VMEM footprint."""
    index_map = lambda i: (0,) * len(shape)
    try:
        return pl.BlockSpec(shape, index_map, pipeline_mode=pl.Buffered(1))
    except (TypeError, AttributeError):               # older jax: no pipeline_mode
        return pl.BlockSpec(shape, index_map)


# --------------------------------------------------------------------------- #
# Kernel                                                                       #
# --------------------------------------------------------------------------- #
def _make_kernel(num_chunks, cb, num_boxes, has_mask):
    rows = cb * num_boxes

    def _chunk(c, img_ref, wi_ref, wa_ref, mask_ref, out_ref, pq_ref):
        b0 = pl.multiple_of(c * cb, 8)
        r0 = pl.multiple_of(c * rows, 8)

        # Image projection: cast the streamed f32 rows to bf16 in VMEM, right
        # before the MXU (single HBM pass for the dominant tensor).
        img_bf = img_ref[pl.ds(r0, rows), :].astype(jnp.bfloat16)
        pimg = jnp.dot(img_bf, wi_ref[...], preferred_element_type=jnp.float32)

        # tanh(query + image) and the Wa contraction on the VPU/XLU; live f32
        # intermediates are bounded to this chunk (cb * num_boxes * P).
        pq_c = pq_ref[pl.ds(b0, cb), :]                       # (cb, P) f32
        h = jnp.tanh(pimg.reshape(cb, num_boxes, -1) + pq_c[:, None, :])
        logits = jnp.sum(h * wa_ref[...].reshape(1, 1, -1), axis=-1)  # (cb, N)

        if mask_ref is None:
            m = jnp.max(logits, axis=-1, keepdims=True)
            e = jnp.exp(logits - m)
            w = e / jnp.sum(e, axis=-1, keepdims=True)        # exact normalization
        else:
            # AllenNLP masked_softmax (non memory-efficient variant), as used by
            # updown: softmax(logits * mask), re-mask, renormalize. The approx
            # reciprocal in the inner softmax is a per-row scale that cancels in
            # the exact final normalization, so it does not affect the result.
            mask = mask_ref[pl.ds(b0, cb), :]
            v = logits * mask
            m = jnp.max(v, axis=-1, keepdims=True)
            e = jnp.exp(v - m)
            sm = e * pl.reciprocal(jnp.sum(e, axis=-1, keepdims=True), approx=True)
            sm = sm * mask
            w = sm / (jnp.sum(sm, axis=-1, keepdims=True) + 1e-13)
        out_ref[pl.ds(b0, cb), :] = w

    def _body(q_ref, img_ref, wq_ref, wi_ref, wa_ref, mask_ref, out_ref, pq_ref):
        # Query projection once per batch tile (Wq pushed through the MXU once).
        pq_ref[...] = jnp.dot(q_ref[...].astype(jnp.bfloat16), wq_ref[...],
                              preferred_element_type=jnp.float32)
        jax.lax.fori_loop(
            0, num_chunks,
            lambda c, _: _chunk(c, img_ref, wi_ref, wa_ref, mask_ref, out_ref,
                                pq_ref),
            None, unroll=True)

    if has_mask:
        def kernel(q_ref, img_ref, wq_ref, wi_ref, wa_ref, mask_ref, out_ref,
                   pq_ref):
            _body(q_ref, img_ref, wq_ref, wi_ref, wa_ref, mask_ref, out_ref,
                  pq_ref)
    else:
        def kernel(q_ref, img_ref, wq_ref, wi_ref, wa_ref, out_ref, pq_ref):
            _body(q_ref, img_ref, wq_ref, wi_ref, wa_ref, None, out_ref, pq_ref)
    return kernel


# --------------------------------------------------------------------------- #
# Wrapper                                                                      #
# --------------------------------------------------------------------------- #
def bottom_up_top_down_attention(query_vector, image_features, wq, wi, wa,
                                 image_features_mask=None):
    """query_vector (B, Q), image_features (B, N, F), Wq (Q, P), Wi (F, P),
    Wa (P, 1) -> attention weights (B, N) float32."""
    B, N, F = image_features.shape
    Q = query_vector.shape[-1]
    P = wq.shape[1]

    # Lane-pad the projection dim (multiple of 128 = lane width). Padded
    # columns contribute exactly zero (tanh(0) * 0), so results are unchanged.
    P_pad = _round_up(P, 128)
    if P_pad != P:
        wq = jnp.pad(wq, ((0, 0), (0, P_pad - P)))
        wi = jnp.pad(wi, ((0, 0), (0, P_pad - P)))
        wa = jnp.pad(wa, ((0, P_pad - P), (0, 0)))
    wq_bf = wq.astype(jnp.bfloat16)          # one-time small weight casts
    wi_bf = wi.astype(jnp.bfloat16)
    wa_row = jnp.reshape(wa, (1, P_pad)).astype(jnp.float32)

    tile_b, cb = _choose_tiles(B, N, F, P_pad)
    num_chunks = tile_b // cb

    # Pad the batch so it tiles evenly; padded rows produce harmless finite
    # values and are sliced off. image_features stay f32 (cast to bf16 inside
    # the kernel) and are pre-flattened so each grid block is a dense 2-D slab.
    B_pad = pl.cdiv(B, tile_b) * tile_b
    pad = B_pad - B
    q_in, img_in = query_vector, image_features
    if pad:
        q_in = jnp.pad(q_in, ((0, pad), (0, 0)))
        img_in = jnp.pad(img_in, ((0, pad), (0, 0), (0, 0)))
    img_flat = img_in.reshape(B_pad * N, F)  # free (row-major) reshape

    has_mask = image_features_mask is not None
    args = [q_in, img_flat, wq_bf, wi_bf, wa_row]
    in_specs = [
        pl.BlockSpec((tile_b, Q), lambda i: (i, 0)),
        # TODO(synk): try pipeline_mode=pl.Buffered(3) here if profiles show
        # exposed DMA on HBM-bound v6e shapes (P <= ~512).
        pl.BlockSpec((tile_b * N, F), lambda i: (i, 0)),
        _resident_spec((Q, P_pad)),
        _resident_spec((F, P_pad)),
        _resident_spec((1, P_pad)),
    ]
    if has_mask:
        mask_f = image_features_mask.astype(jnp.float32)
        if pad:
            mask_f = jnp.pad(mask_f, ((0, pad), (0, 0)))
        args.append(mask_f)
        in_specs.append(pl.BlockSpec((tile_b, N), lambda i: (i, 0)))

    kernel = _make_kernel(num_chunks, cb, N, has_mask)

    flops = (2 * B_pad * N * F * P_pad + 2 * B_pad * Q * P_pad
             + 2 * B_pad * N * P_pad)
    transcendentals = B_pad * N * P_pad + 2 * B_pad * N
    bytes_accessed = (B_pad * N * F * 4 + B_pad * Q * 4
                      + (Q + F) * P_pad * 2 + P_pad * 4
                      + B_pad * N * 4 * (2 if has_mask else 1))

    out = pl.pallas_call(
        kernel,
        out_shape=jax.ShapeDtypeStruct((B_pad, N), jnp.float32),
        grid_spec=pltpu.PrefetchScalarGridSpec(
            num_scalar_prefetch=0,
            grid=(B_pad // tile_b,),
            in_specs=in_specs,
            out_specs=pl.BlockSpec((tile_b, N), lambda i: (i, 0)),
            scratch_shapes=[pltpu.VMEM((tile_b, P_pad), jnp.float32)],
        ),
        compiler_params=pltpu.CompilerParams(
            dimension_semantics=("parallel",),
            vmem_limit_bytes=_vmem_limit_bytes(tile_b, cb, N, F, Q, P_pad,
                                               has_mask),
        ),
        cost_estimate=pl.CostEstimate(
            flops=flops,
            transcendentals=transcendentals,
            bytes_accessed=bytes_accessed),
    )(*args)
    return out[:B]


# --------------------------------------------------------------------------- #
# Demo / sanity check                                                          #
# --------------------------------------------------------------------------- #
if __name__ == "__main__":
    B = 2      # batch size
    N = 8      # num_boxes
    Q = 32     # query_size
    F = 64     # image_feature_size
    P = 32     # projection_size

    key = jax.random.PRNGKey(0)
    kq, kimg, kwq, kwi, kwa = jax.random.split(key, 5)

    query_vector = jax.random.normal(kq, (B, Q), dtype=jnp.float32)
    image_features = jax.random.normal(kimg, (B, N, F), dtype=jnp.float32)

    # nn.Linear-style weights stored as (in, out) so the kernel uses x @ W.
    wq = jax.random.uniform(kwq, (Q, P), jnp.float32, -1.0, 1.0) / jnp.sqrt(Q)
    wi = jax.random.uniform(kwi, (F, P), jnp.float32, -1.0, 1.0) / jnp.sqrt(F)
    wa = jax.random.uniform(kwa, (P, 1), jnp.float32, -1.0, 1.0) / jnp.sqrt(P)

    # Adaptive-features mask: second instance only has 5 valid boxes.
    mask = jnp.array([[1.0] * N,
                      [1.0] * 5 + [0.0] * (N - 5)], dtype=jnp.float32)

    w_nomask = bottom_up_top_down_attention(query_vector, image_features, wq, wi, wa)
    w_masked = bottom_up_top_down_attention(query_vector, image_features, wq, wi, wa,
                                            image_features_mask=mask)
    jax.block_until_ready((w_nomask, w_masked))

    # Pure-JAX reference with the same bf16 matmul inputs (f32 accumulation).
    def _ref(q, img, wq_, wi_, wa_, m=None):
        pq = jnp.dot(q.astype(jnp.bfloat16), wq_.astype(jnp.bfloat16),
                     preferred_element_type=jnp.float32)
        pimg = jnp.einsum("bnf,fp->bnp", img.astype(jnp.bfloat16),
                          wi_.astype(jnp.bfloat16),
                          preferred_element_type=jnp.float32)
        logits = jnp.sum(jnp.tanh(pq[:, None, :] + pimg) * wa_.reshape(1, 1, -1),
                         axis=-1)
        if m is None:
            return jax.nn.softmax(logits, axis=-1)
        v = logits * m
        sm = jax.nn.softmax(v, axis=-1) * m
        return sm / (jnp.sum(sm, axis=-1, keepdims=True) + 1e-13)

    ref_nomask = _ref(query_vector, image_features, wq, wi, wa)
    ref_masked = _ref(query_vector, image_features, wq, wi, wa, mask)

    assert w_nomask.shape == (B, N) and w_masked.shape == (B, N)
    assert jnp.allclose(jnp.sum(w_nomask, axis=-1), 1.0, atol=1e-2)
    assert jnp.allclose(jnp.sum(w_masked, axis=-1), 1.0, atol=1e-2)
    assert jnp.all(w_masked[1, 5:] == 0.0)
    assert jnp.allclose(w_nomask, ref_nomask, atol=1e-2)
    assert jnp.allclose(w_masked, ref_masked, atol=1e-2)

    print("KERNEL_OK")
</pallas_src>

<mosaic_0001>
module attributes {stable_mosaic.version = 11 : i64} {
  func.func @kernel(%arg0: i32, %arg1: memref<8x32xf32, #tpu.memory_space<vmem>>, %arg2: memref<64x64xf32, #tpu.memory_space<vmem>>, %arg3: memref<32x128xbf16, #tpu.memory_space<vmem>>, %arg4: memref<64x128xbf16, #tpu.memory_space<vmem>>, %arg5: memref<1x128xf32, #tpu.memory_space<vmem>>, %arg6: memref<8x8xf32, #tpu.memory_space<vmem>>, %arg7: memref<8x128xf32, #tpu.memory_space<vmem>>) attributes {dimension_semantics = [#tpu.dimension_semantics<parallel>], iteration_bounds = array<i64: 1>, scalar_prefetch = 0 : i64, scratch_operands = 1 : i64, tpu.core_type = #tpu.core_type<tc>, window_params = [{transform_indices = @transform_0, window_bounds = array<i64: 8, 32>}, {transform_indices = @transform_1, window_bounds = array<i64: 64, 64>}, {pipeline_mode = #tpu.pipeline_mode<synchronous>, transform_indices = @transform_2, window_bounds = array<i64: 32, 128>}, {pipeline_mode = #tpu.pipeline_mode<synchronous>, transform_indices = @transform_3, window_bounds = array<i64: 64, 128>}, {pipeline_mode = #tpu.pipeline_mode<synchronous>, transform_indices = @transform_4, window_bounds = array<i64: 1, 128>}, {transform_indices = @transform_5, window_bounds = array<i64: 8, 8>}]} {
    %c0 = arith.constant 0 : index
    %c0_0 = arith.constant 0 : index
    %0 = vector.load %arg1[%c0, %c0_0] : memref<8x32xf32, #tpu.memory_space<vmem>>, vector<8x32xf32>
    %1 = arith.truncf %0 : vector<8x32xf32> to vector<8x32xbf16>
    %c0_1 = arith.constant 0 : index
    %c0_2 = arith.constant 0 : index
    %2 = vector.load %arg3[%c0_1, %c0_2] : memref<32x128xbf16, #tpu.memory_space<vmem>>, vector<32x128xbf16>
    %cst = arith.constant dense<0.000000e+00> : vector<8x128xf32>
    %3 = tpu.matmul %1, %2, %cst {dimension_numbers = #tpu.dot_dimension_numbers<[1], [0], [0], [1], [0, 0, 1, 1], [], []>} : vector<8x32xbf16>, vector<32x128xbf16>, vector<8x128xf32> -> vector<8x128xf32>
    %c0_3 = arith.constant 0 : index
    %c0_4 = arith.constant 0 : index
    %4 = vector.load %arg7[%c0_3, %c0_4] : memref<8x128xf32, #tpu.memory_space<vmem>>, vector<8x128xf32>
    tpu.vector_store %arg7[%c0_3, %c0_4], %3 {strides = array<i32>} : memref<8x128xf32, #tpu.memory_space<vmem>>, vector<8x128xf32>,
    %c0_i32 = arith.constant 0 : i32
    %c8_i32 = arith.constant 8 : i32
    %5 = arith.muli %c0_i32, %c8_i32 : i32
    %6 = tpu.assume_multiple %5, 8 : i32
    %c64_i32 = arith.constant 64 : i32
    %7 = arith.muli %c0_i32, %c64_i32 : i32
    %8 = tpu.assume_multiple %7, 8 : i32
    %9 = arith.index_cast %8 : i32 to index
    %c0_5 = arith.constant 0 : index
    %10 = vector.load %arg2[%9, %c0_5] : memref<64x64xf32, #tpu.memory_space<vmem>>, vector<64x64xf32>
    %11 = arith.truncf %10 : vector<64x64xf32> to vector<64x64xbf16>
    %c0_6 = arith.constant 0 : index
    %c0_7 = arith.constant 0 : index
    %12 = vector.load %arg4[%c0_6, %c0_7] : memref<64x128xbf16, #tpu.memory_space<vmem>>, vector<64x128xbf16>
    %cst_8 = arith.constant dense<0.000000e+00> : vector<64x128xf32>
    %13 = tpu.matmul %11, %12, %cst_8 {dimension_numbers = #tpu.dot_dimension_numbers<[1], [0], [0], [1], [0, 0, 1, 1], [], []>} : vector<64x64xbf16>, vector<64x128xbf16>, vector<64x128xf32> -> vector<64x128xf32>
    %14 = arith.index_cast %6 : i32 to index
    %c0_9 = arith.constant 0 : index
    %15 = vector.load %arg7[%14, %c0_9] : memref<8x128xf32, #tpu.memory_space<vmem>>, vector<8x128xf32>
    %16 = vector.shape_cast %13 : vector<64x128xf32> to vector<8x8x128xf32>
    %17 = vector.shape_cast %15 : vector<8x128xf32> to vector<8x1x128xf32>
    %18 = vector.broadcast %17 : vector<8x1x128xf32> to vector<8x8x128xf32>
    %19 = arith.addf %16, %18 : vector<8x8x128xf32>
    %20 = math.tanh %19 : vector<8x8x128xf32>
    %c0_10 = arith.constant 0 : index
    %c0_11 = arith.constant 0 : index
    %21 = vector.load %arg5[%c0_10, %c0_11] : memref<1x128xf32, #tpu.memory_space<vmem>>, vector<1x128xf32>
    %22 = vector.shape_cast %21 : vector<1x128xf32> to vector<1x1x128xf32>
    %23 = vector.broadcast %22 : vector<1x1x128xf32> to vector<8x8x128xf32>
    %24 = arith.mulf %20, %23 : vector<8x8x128xf32>
    %cst_12 = arith.constant dense<0.000000e+00> : vector<8x8xf32>
    %25 = vector.multi_reduction <add>, %24, %cst_12 [2] : vector<8x8x128xf32> to vector<8x8xf32>
    %cst_13 = arith.constant dense<0xFF800000> : vector<8xf32>
    %26 = vector.multi_reduction <maximumf>, %25, %cst_13 [1] : vector<8x8xf32> to vector<8xf32>
    %27 = vector.shape_cast %26 : vector<8xf32> to vector<8x1xf32>
    %28 = vector.broadcast %27 : vector<8x1xf32> to vector<8x8xf32>
    %29 = arith.subf %25, %28 : vector<8x8xf32>
    %30 = math.exp %29 : vector<8x8xf32>
    %cst_14 = arith.constant dense<0.000000e+00> : vector<8xf32>
    %31 = vector.multi_reduction <add>, %30, %cst_14 [1] : vector<8x8xf32> to vector<8xf32>
    %32 = vector.shape_cast %31 : vector<8xf32> to vector<8x1xf32>
    %33 = vector.broadcast %32 : vector<8x1xf32> to vector<8x8xf32>
    %34 = arith.divf %30, %33 : vector<8x8xf32>
    %35 = arith.index_cast %6 : i32 to index
    %c0_15 = arith.constant 0 : index
    %36 = vector.load %arg6[%35, %c0_15] : memref<8x8xf32, #tpu.memory_space<vmem>>, vector<8x8xf32>
    tpu.vector_store %arg6[%35, %c0_15], %34 {strides = array<i32>} : memref<8x8xf32, #tpu.memory_space<vmem>>, vector<8x8xf32>,
    %c1_i32 = arith.constant 1 : i32
    return
  }
  func.func @transform_0(%arg0: i32) -> (i32, i32) {
    %c0_i32 = arith.constant 0 : i32
    %c0_i32_0 = arith.constant 0 : i32
    return %arg0, %c0_i32 : i32, i32
  }
  func.func @transform_1(%arg0: i32) -> (i32, i32) {
    %c0_i32 = arith.constant 0 : i32
    %c0_i32_0 = arith.constant 0 : i32
    return %arg0, %c0_i32 : i32, i32
  }
  func.func @transform_2(%arg0: i32) -> (i32, i32) {
    %c0_i32 = arith.constant 0 : i32
    %c0_i32_0 = arith.constant 0 : i32
    %c0_i32_1 = arith.constant 0 : i32
    return %c0_i32, %c0_i32_0 : i32, i32
  }
  func.func @transform_3(%arg0: i32) -> (i32, i32) {
    %c0_i32 = arith.constant 0 : i32
    %c0_i32_0 = arith.constant 0 : i32
    %c0_i32_1 = arith.constant 0 : i32
    return %c0_i32, %c0_i32_0 : i32, i32
  }
  func.func @transform_4(%arg0: i32) -> (i32, i32) {
    %c0_i32 = arith.constant 0 : i32
    %c0_i32_0 = arith.constant 0 : i32
    %c0_i32_1 = arith.constant 0 : i32
    return %c0_i32, %c0_i32_0 : i32, i32
  }
  func.func @transform_5(%arg0: i32) -> (i32, i32) {
    %c0_i32 = arith.constant 0 : i32
    %c0_i32_0 = arith.constant 0 : i32
    return %arg0, %c0_i32 : i32, i32
  }
}

</mosaic_0001>

<bundles_post_ra>
// kernel: tpu_custom_call.1
= control target key start
LH: loop header
LB: loop body
LE: loop exit
PB: predicated region body
PF: predicated region fallthrough
CT: control target
= control target key end

     0   :  { %10 = vsyncpa [#allocation4], 0  ;;  %s1167_s0 = inlined_call_operand.hbm [shape: f32[8,32], index: 0, kind: input, shape index: {}]   ;;  %s1168_s1 = inlined_call_operand.hbm [shape: f32[64,64], index: 1, kind: input, shape index: {}]   ;;  %s1169_s2 = inlined_call_operand.hbm [shape: bf16[32,128], index: 2, kind: input, shape index: {}]   ;;  %s1170_s3 = inlined_call_operand.hbm [shape: bf16[64,128], index: 3, kind: input, shape index: {}]   ;;  %s1171_s4 = inlined_call_operand.vmem [shape: f32[1,128], index: 4, kind: input, shape index: {}]   ;;  %s1172_s5 = inlined_call_operand.hbm [shape: f32[8,8], index: 5, kind: output, shape index: {}]  }
   0x1   :  { %11 = vsyncpa [#allocation7], 0 }
   0x2   :  { %12 = vsyncpa [#allocation10], 0 }
   0x3   :  { %13 = vsyncpa [#allocation5], 0  ;;  %s970_s18 = smov [#allocation6]  }
   0x4   :  { %s29_s19 = sshll.u32 %s970_s18, 4  ;;  %s30_s19 = int_to_ptr.vmem [resolvable:$true] %s29_s19 }
   0x5   :  { %s870_s20 = scalar_lea.vmem %s30_s19, 1024  ;;  %p875_p1 = scmp.lt.s32.totalorder %s30_s19, %s30_s19 }
   0x6   :  { %p871_p0 = scmp.ne.s32.totalorder %s30_s19, %s870_s20  ;;  %p876_p2 = scmp.lt.s32.totalorder %s870_s20, %s870_s20 }
   0x8   :  { %p877_p3 = por %p876_p2, %p875_p1 }
   0xa   :  { %p878_p4 = pnand %p877_p3, %p871_p0 }
   0xc   :  { %881 = shalt.err (!%p878_p4)
}
   0xd   :  { %s971_s21 = smov 128   ;;  %s972_s22 = smov 8  }
   0xe   :  { %35 = dma.hbm_to_vmem [thread:$0]  %s1168_s1, 1024, %s30_s19, [#allocation7], %s971_s21, %s971_s21, %s972_s22  }
   0xf   :  { %s973_s25 = smov [#allocation3]   ;;  %s974_s27 = smov [#allocation8]  }
  0x10   :  { %s20_s26 = sshll.u32 %s973_s25, 4  ;;  %s41_s28 = sshll.u32 %s974_s27, 4  ;;  %s21_s26 = int_to_ptr.vmem [resolvable:$true] %s20_s26  ;;  %s42_s28 = int_to_ptr.vmem [resolvable:$true] %s41_s28 }
  0x11   :  { %s890_s29 = scalar_lea.vmem %s21_s26, 128  ;;  %p895_p6 = scmp.lt.s32.totalorder %s21_s26, %s21_s26 }
  0x12   :  { %p891_p5 = scmp.ne.s32.totalorder %s21_s26, %s890_s29  ;;  %p896_p7 = scmp.lt.s32.totalorder %s890_s29, %s890_s29 }
  0x14   :  { %p897_p8 = por %p896_p7, %p895_p6 }
  0x16   :  { %p898_p9 = pnand %p897_p8, %p891_p5 }
  0x18   :  { %901 = shalt.err (!%p898_p9)
}
  0x19   :  { %23 = dma.hbm_to_vmem [thread:$0]  %s1167_s0, 128, %s21_s26, [#allocation4]  }
  0x1a   :  { %s910_s7 = scalar_lea.vmem %s42_s28, 256  ;;  %p915_p11 = scmp.lt.s32.totalorder %s42_s28, %s42_s28 }
  0x1b   :  { %p911_p10 = scmp.ne.s32.totalorder %s42_s28, %s910_s7  ;;  %p916_p12 = scmp.lt.s32.totalorder %s910_s7, %s910_s7 }
  0x1d   :  { %p917_p13 = por %p916_p12, %p915_p11 }
  0x1f   :  { %p918_p0 = pnand %p917_p13, %p911_p10 }
  0x21   :  { %921 = shalt.err (!%p918_p0)
}
  0x22   :  { %s975_s1 = smov 64   ;;  %s976_s8 = smov 4  }
  0x23   :  { %47 = dma.hbm_to_vmem [thread:$0]  %s1169_s2, 256, %s42_s28, [#allocation7], %s975_s1, %s975_s1, %s976_s8  }
  0x24   :  { %s977_s11 = smov [#allocation9]  }
  0x25   :  { %s53_s12 = sshll.u32 %s977_s11, 4  ;;  %s54_s12 = int_to_ptr.vmem [resolvable:$true] %s53_s12 }
  0x26   :  { %s930_s13 = scalar_lea.vmem %s54_s12, 512  ;;  %p935_p2 = scmp.lt.s32.totalorder %s54_s12, %s54_s12 }
  0x27   :  { %p931_p1 = scmp.ne.s32.totalorder %s54_s12, %s930_s13  ;;  %p936_p3 = scmp.lt.s32.totalorder %s930_s13, %s930_s13 }
  0x29   :  { %p937_p4 = por %p936_p3, %p935_p2 }
  0x2b   :  { %p938_p5 = pnand %p937_p4, %p931_p1 }
  0x2d   :  { %941 = shalt.err (!%p938_p5)
}
  0x2e   :  { %59 = dma.hbm_to_vmem [thread:$0]  %s1170_s3, 512, %s54_s12, [#allocation10], %s975_s1, %s975_s1, %s976_s8  }
  0x2f   :  { %962 = dma.done.wait [#allocation4], 128  }
  0x30   :  { %963 = vsyncadd [#allocation4], 4294967168 }
  0x31   :  { %964 = dma.done.wait [#allocation7], 1280  }
  0x32   :  { %965 = vsyncadd [#allocation7], 4294966016 }
  0x33   :  { %966 = dma.done.wait [#allocation10], 512  }
  0x34   :  { %967 = vsyncadd [#allocation10], 4294966784  ;;  %v978_v0 = vmov 0.0   ;;  %vm979_vm0 = vmmov 0   ;;  %v808_v1 = vld [vmem:[#allocation9 + $0x18] sm:$0xff]   ;;  %v810_v3 = vld [vmem:[#allocation9 + $0x10] sm:$0xff]   ;;  %v266_v23 = vlaneseq }
  0x35   :  { %769 = vmatprep.subr.bf16.mxu0 %v978_v0  ;;  %773 = vmatprep.mubr.msk.bf16.mxu0 %vm979_vm0, %v978_v0  ;;  %v809_v2 = vld [vmem:[#allocation8 + $0x8] sm:$0xff]   ;;  %v811_v4 = vld [vmem:[#allocation8] sm:$0xff]   ;;  %v75_v5 = vld [vmem:[#allocation3] sm:$0xff]  ;;  %vm182_vm1 = vcmask 523264   ;;  %vm93_vm2 = vcmask 261120   ;;  %vm440_vm3 = vcmask 1041409  }
  0x36   :  { %777 = vmatprep.subr.bf16.mxu1 %v808_v1  ;;  %770 = vmatpush3.bf16.msra.mxu0 %v809_v2  ;;  %v812_v6 = vld [vmem:[#allocation9 + $0x8] sm:$0xff]   ;;  %v76_v7 = vpack.c.bf16 %v75_v5, %v75_v5  ;;  %v138_v8 = vld [vmem:[#allocation6] sm:$0xff]  ;;  %v139_v9 = vld [vmem:[#allocation6 + $0x8] sm:$0xff]  ;;  %v980_v21 = vmov 1966171168   ;;  %v1030_v25 = vshrl.u32 %v266_v23, 7 }
  0x37   :  { %778 = vmatpush3.bf16.msra.mxu1 %v808_v1  ;;  %771 = vmatprep.subr.bf16.mxu0 %v978_v0  ;;  %v146_v10 = vpack.c.bf16 %v139_v9, %v138_v8  ;;  %v813_v11 = vld [vmem:[#allocation9] sm:$0xff]   ;;  %v141_v13 = vld [vmem:[#allocation6 + $0x18] sm:$0xff]  ;;  %v142_v14 = vld [vmem:[#allocation6 + $0x20] sm:$0xff]  ;;  %v264_v22 = vunpack.c.l.s4 %v980_v21  ;;  %vm442_vm4 = vcmask 1042434   ;;  %vm444_vm5 = vcmask 1043459  }
  0x38   :  { %779 = vmatprep.subr.bf16.mxu1 %v810_v3  ;;  %v140_v12 = vld [vmem:[#allocation6 + $0x10] sm:$0xff]  ;;  %v143_v15 = vld [vmem:[#allocation6 + $0x28] sm:$0xff]  ;;  %v145_v19 = vld [vmem:[#allocation6 + $0x38] sm:$0xff]  ;;  %v1034_v34 = vsub.s32 0, %v1030_v25  ;;  %vm446_vm6 = vcmask 1044484   ;;  %vm448_vm7 = vcmask 1045509  }
  0x39   :  { %785 = vmatprep.mubr.msk.bf16.mxu1 %vm182_vm1, %v146_v10  ;;  %v147_v16 = vpack.c.bf16 %v141_v13, %v140_v12  ;;  %v148_v17 = vpack.c.bf16 %v143_v15, %v142_v14  ;;  %v144_v18 = vld [vmem:[#allocation6 + $0x30] sm:$0xff]  ;;  %v265_v24 = vunpack.c.0.s8 %v264_v22  ;;  %v407_v22 = vand.u32 127, %v266_v23 }
  0x3a   :  { %772 = vmatpush3.bf16.msra.mxu0 %v811_v4  ;;  %v149_v20 = vpack.c.bf16 %v145_v19, %v144_v18  ;;  %vm450_vm8 = vcmask 1046534   ;;  %vm452_vm9 = vcmask 1047559   ;;  %vm455_vm10 = vcmask 64512  }
  0x3b   :  { %780 = vmatpush3.bf16.msra.mxu1 %v810_v3  ;;  %v268_v26 = vsub.s32 %v265_v24, %v1030_v25  ;;  %v757_v3 = vld [vmem:[%s1171_s4] ss:$0 sm:$0xff]  ;;  %s982_s4 = smov [#allocation11]  }
  0x3c   :  { %781 = vmatprep.subr.bf16.mxu1 %v812_v6  ;;  %s735_s15 = sshll.u32 %s982_s4, 4  ;;  %s736_s15 = int_to_ptr.vmem [resolvable:$true] %s735_s15 }
  0x3d   :  { %774 = vmatmul.mubr.msk.bf16.vlgmr.msra.gmra.mxu0 %vm93_vm2, %v76_v7  ;;  %s942_s16 = scalar_lea.vmem %s736_s15, 128  ;;  %p947_p7 = scmp.lt.s32.totalorder %s736_s15, %s736_s15 }
  0x3e   :  { %p943_p6 = scmp.ne.s32.totalorder %s736_s15, %s942_s16  ;;  %p948_p8 = scmp.lt.s32.totalorder %s942_s16, %s942_s16 }
  0x3f   :  { %782 = vmatpush3.bf16.msra.mxu1 %v812_v6 }
  0x40   :  { %783 = vmatprep.subr.bf16.mxu1 %v813_v11  ;;  %p949_p9 = por %p948_p8, %p947_p7 }
  0x42   :  { %p950_p10 = pnand %p949_p9, %p943_p6 }
  0x43   :  { %784 = vmatpush3.bf16.msra.mxu1 %v813_v11 }
  0x46   :  { %786 = vmatmul.mubr.msk.bf16.vlgmr.msra.gmra.mxu1 %vm182_vm1, %v147_v16 }
  0x47   :  { %789 = vmatprep.mubr.msk.bf16.mxu1 %vm182_vm1, %v148_v17 }
  0x4e   :  { %790 = vmatmul.mubr.msk.bf16.gmra.mxu1 %vm182_vm1, %v149_v20 }
  0xfd   :  { %v131_v27 = vpop.f32.mrf.mxu0 }
  0xfe   :  { %v262_v28 = vcombine.high %v131_v27, %v131_v27  ;;  %v269_v29 = vrot.slane %v131_v27, %v268_v26  ;;  %v1049_v27 = vsub.s32 %v407_v22, %v1030_v25 }
  0xff   :  { %v775_v30 = vpop.f32.mrf.mxu0 }
 0x100   :  { %v276_v31 = vrot.slane %v262_v28, %v268_v26  ;;  %v277_v32 = vcombine.high %v269_v29, %v269_v29  ;;  %v285_v33 = vrot.slane %v269_v29, %v268_v26 }
 0x101   :  { %v134_v35 = vpop.f32.mrf.mxu0 }
 0x102   :  { %v299_v36 = vrot.slane %v277_v32, %v268_v26  ;;  %v307_v37 = vcombine.high %v285_v33, %v285_v33  ;;  %v292_v39 = vrot.slane %v276_v31, %v268_v26  ;;  %v314_v41 = vrot.slane %v285_v33, %v1034_v34 }
 0x103   :  { %v776_v38 = vpop.f32.mrf.mxu0  ;;  %v278_v44 = vcombine.high %v276_v31, %v276_v31 }
 0x104   :  { %v322_v40 = vrot.slane %v307_v37, %v1034_v34  ;;  %v309_v42 = vcombine.high %v299_v36, %v299_v36  ;;  %v318_v49 = vrot.slane %v299_v36, %v1034_v34  ;;  %v308_v50 = vcombine.high %v292_v39, %v292_v39 }
 0x105   :  { %v306_v53 = vrot.slane %v278_v44, %v268_v26  ;;  %v330_v58 = vrot.slane %v292_v39, %v1034_v34 }
 0x106   :  { %v787_v43 = vpop.f32.mrf.mxu1  ;;  %v326_v46 = vrot.slane %v309_v42, %v1034_v34  ;;  %v338_v56 = vrot.slane %v308_v50, %v1034_v34  ;;  %v981_v50 = vmov 0  }
 0x107   :  { %v353_v45 = vadd.f32 %v787_v43, %v322_v40  ;;  %v310_v59 = vcombine.high %v306_v53, %v306_v53  ;;  %v334_v1 = vrot.slane %v306_v53, %v1034_v34  ;;  %807 = vset.pattern.permute.xlu0 %v981_v50  ;;  %806 = vset.pattern.permute.xlu1 %v981_v50  ;;  %v474_v53 = vsub.s32 3, %v1030_v25 }
 0x108   :  { %v229_v47 = vpop.f32.mrf.mxu1 }
 0x109   :  { %814 = vtanh.f32 %v353_v45  ;;  %v351_v48 = vadd.f32 %v314_v41, %v229_v47  ;;  %v342_v0 = vrot.slane %v310_v59, %v1034_v34 }
 0x10a   :  { %v788_v51 = vpop.f32.mrf.mxu1 }
 0x10b   :  { %816 = vtanh.f32 %v351_v48  ;;  %v354_v52 = vadd.f32 %v788_v51, %v326_v46  ;;  %v466_v51 = vsub.s32 1, %v1030_v25 }
 0x10c   :  { %v232_v54 = vpop.f32.mrf.mxu1 }
 0x10d   :  { %818 = vtanh.f32 %v354_v52  ;;  %v352_v55 = vadd.f32 %v318_v49, %v232_v54  ;;  %v470_v52 = vsub.s32 2, %v1030_v25 }
 0x10e   :  { %v791_v57 = vpop.f32.mrf.mxu1 }
 0x10f   :  { %820 = vtanh.f32 %v352_v55  ;;  %v357_v61 = vadd.f32 %v791_v57, %v338_v56 }
 0x110   :  { %v245_v60 = vpop.f32.mrf.mxu1 }
 0x111   :  { %v355_v62 = vadd.f32 %v330_v58, %v245_v60  ;;  %v478_v58 = vsub.s32 4, %v1030_v25 }
 0x112   :  { %v792_v63 = vpop.f32.mrf.mxu1 }
 0x113   :  { %822 = vtanh.f32 %v355_v62  ;;  %v358_v4 = vadd.f32 %v792_v63, %v342_v0 }
 0x114   :  { %v248_v2 = vpop.f32.mrf.mxu1  ;;  %824 = vtanh.f32 %v357_v61 }
 0x115   :  { %v356_v5 = vadd.f32 %v334_v1, %v248_v2  ;;  %v482_v1 = vsub.s32 5, %v1030_v25 }
 0x116   :  { %v815_v6 = vpop.eup %814 }
 0x117   :  { %826 = vtanh.f32 %v356_v5  ;;  %v376_v7 = vmul.f32 %v815_v6, %v757_v3  ;;  %v486_v5 = vsub.s32 6, %v1030_v25 }
 0x118   :  { %v817_v8 = vpop.eup %816  ;;  %828 = vtanh.f32 %v358_v4 }
 0x119   :  { %386 = vadd.xlane.f32.xlu1 %v376_v7  ;;  %v374_v9 = vmul.f32 %v817_v8, %v757_v3 }
 0x11a   :  { %v819_v10 = vpop.eup %818 }
 0x11b   :  { %382 = vadd.xlane.f32.xlu0 %v374_v9  ;;  %v377_v11 = vmul.f32 %v819_v10, %v757_v3  ;;  %v490_v9 = vsub.s32 7, %v1030_v25 }
 0x11c   :  { %v821_v12 = vpop.eup %820 }
 0x11d   :  { %388 = vadd.xlane.f32.xlu1 %v377_v11  ;;  %v375_v13 = vmul.f32 %v821_v12, %v757_v3 }
 0x11f   :  { %384 = vadd.xlane.f32.xlu0 %v375_v13 }
 0x120   :  { %v823_v14 = vpop.eup %822 }
 0x121   :  { %v378_v15 = vmul.f32 %v823_v14, %v757_v3  ;;  %v825_v16 = vpop.eup %824 }
 0x122   :  { %v380_v18 = vmul.f32 %v825_v16, %v757_v3 }
 0x123   :  { %390 = vadd.xlane.f32.xlu0 %v378_v15 }
 0x124   :  { %v827_v17 = vpop.eup %826 }
 0x125   :  { %v379_v19 = vmul.f32 %v827_v17, %v757_v3  ;;  %v829_v20 = vpop.eup %828 }
 0x126   :  { %v381_v21 = vmul.f32 %v829_v20, %v757_v3 }
 0x127   :  { %394 = vadd.xlane.f32.xlu0 %v380_v18  ;;  %392 = vadd.xlane.f32.xlu1 %v379_v19 }
 0x12b   :  { %396 = vadd.xlane.f32.xlu1 %v381_v21 }
 0x1a2   :  { %v387_v24 = vpop.xlane.xlu1 %386 }
 0x1a3   :  { %v419_v31 = vrot.slane %v387_v24, %v1049_v27 }
 0x1a4   :  { %v383_v26 = vpop.xlane.xlu0 %382 }
 0x1a5   :  { %v411_v29 = vrot.slane %v383_v26, %v1049_v27 }
 0x1a6   :  { %v389_v32 = vpop.xlane.xlu1 %388 }
 0x1a7   :  { %v423_v36 = vrot.slane %v389_v32, %v1049_v27 }
 0x1a8   :  { %v385_v28 = vpop.xlane.xlu0 %384 }
 0x1a9   :  { %v415_v30 = vrot.slane %v385_v28, %v1049_v27 }
 0x1ab   :  { %v441_v33 = vsel %vm440_vm3, %v415_v30, %v411_v29 }
 0x1ac   :  { %v443_v35 = vsel %vm442_vm4, %v419_v31, %v441_v33  ;;  %v391_v23 = vpop.xlane.xlu0 %390 }
 0x1ad   :  { %v427_v37 = vrot.slane %v391_v23, %v1049_v27  ;;  %v445_v38 = vsel %vm444_vm5, %v423_v36, %v443_v35 }
 0x1af   :  { %v447_v42 = vsel %vm446_vm6, %v427_v37, %v445_v38 }
 0x1b0   :  { %v395_v39 = vpop.xlane.xlu0 %394  ;;  %v393_v40 = vpop.xlane.xlu1 %392 }
 0x1b1   :  { %v431_v41 = vrot.slane %v393_v40, %v1049_v27  ;;  %v435_v43 = vrot.slane %v395_v39, %v1049_v27 }
 0x1b3   :  { %v449_v44 = vsel %vm448_vm7, %v431_v41, %v447_v42 }
 0x1b4   :  { %v397_v45 = vpop.xlane.xlu1 %396  ;;  %v451_v47 = vsel %vm450_vm8, %v435_v43, %v449_v44 }
 0x1b5   :  { %v439_v46 = vrot.slane %v397_v45, %v1049_v27 }
 0x1b7   :  { %v453_v48 = vsel %vm452_vm9, %v439_v46, %v451_v47 }
 0x1b8   :  { %v456_v49 = vsel %vm455_vm10, %v453_v48, -inf }
 0x1b9   :  { %457 = vmax.xlane.f32.xlu0 %v456_v49 }
 0x242   :  { %v458_v54 = vpop.xlane.xlu0 %457 }
 0x243   :  { %v463_v55 = vrot.slane %v458_v54, %v1034_v34  ;;  %v467_v56 = vrot.slane %v458_v54, %v466_v51  ;;  %v471_v57 = vrot.slane %v458_v54, %v470_v52  ;;  %v475_v59 = vrot.slane %v458_v54, %v474_v53 }
 0x244   :  { %v479_v2 = vrot.slane %v458_v54, %v478_v58  ;;  %v483_v6 = vrot.slane %v458_v54, %v482_v1  ;;  %v487_v10 = vrot.slane %v458_v54, %v486_v5  ;;  %v491_v13 = vrot.slane %v458_v54, %v490_v9 }
 0x245   :  { %v500_v60 = vsub.f32 %v383_v26, %v463_v55  ;;  %v501_v61 = vsub.f32 %v385_v28, %v467_v56  ;;  %v502_v62 = vsub.f32 %v387_v24, %v471_v57  ;;  %v503_v3 = vsub.f32 %v389_v32, %v475_v59 }
 0x246   :  { %v504_v7 = vsub.f32 %v391_v23, %v479_v2  ;;  %v505_v11 = vsub.f32 %v393_v40, %v483_v6  ;;  %v506_v14 = vsub.f32 %v395_v39, %v487_v10  ;;  %v507_v18 = vsub.f32 %v397_v45, %v491_v13 }
 0x247   :  { %v508_v63 = vmul.f32 1.442695, %v500_v60  ;;  %v510_v0 = vmul.f32 1.442695, %v501_v61  ;;  %v512_v4 = vmul.f32 1.442695, %v502_v62 }
 0x248   :  { %v514_v8 = vmul.f32 1.442695, %v503_v3  ;;  %v516_v12 = vmul.f32 1.442695, %v504_v7  ;;  %v518_v15 = vmul.f32 1.442695, %v505_v11 }
 0x249   :  { %830 = vpow2.f32 %v508_v63  ;;  %v520_v19 = vmul.f32 1.442695, %v506_v14  ;;  %v522_v21 = vmul.f32 1.442695, %v507_v18 }
 0x24a   :  { %832 = vpow2.f32 %v510_v0 }
 0x24b   :  { %834 = vpow2.f32 %v512_v4 }
 0x24c   :  { %836 = vpow2.f32 %v514_v8 }
 0x24d   :  { %838 = vpow2.f32 %v516_v12 }
 0x24e   :  { %840 = vpow2.f32 %v518_v15 }
 0x24f   :  { %842 = vpow2.f32 %v520_v19 }
 0x250   :  { %844 = vpow2.f32 %v522_v21 }
 0x256   :  { %v831_v16 = vpop.eup %830 }
 0x257   :  { %v1089_v17 = vpop.eup %832  ;;  %533 = vperm.xlu1 %806, %v831_v16  }
 0x258   :  { %536 = vperm.xlu0 %807, %v1089_v17   ;;  %v1092_v20 = vpop.eup %834 }
 0x259   :  { %v1095_v22 = vpop.eup %836 }
 0x25a   :  { %v1098_v24 = vpop.eup %838 }
 0x25b   :  { %539 = vperm.xlu1 %806, %v1092_v20   ;;  %v1101_v26 = vpop.eup %840 }
 0x25c   :  { %v1104_v28 = vpop.eup %842 }
 0x25d   :  { %v1107_v29 = vpop.eup %844 }
 0x25f   :  { %542 = vperm.xlu1 %806, %v1095_v22  }
 0x263   :  { %545 = vperm.xlu1 %806, %v1098_v24  }
 0x267   :  { %548 = vperm.xlu1 %806, %v1101_v26  }
 0x26b   :  { %551 = vperm.xlu1 %806, %v1104_v28  }
 0x26f   :  { %554 = vperm.xlu1 %806, %v1107_v29  }
 0x2d2   :  { %v534_v30 = vpop.permute.xlu1 %533 }
 0x2d3   :  { %v537_v35 = vpop.permute.xlu0 %536  ;;  %v559_v37 = vrot.slane %v534_v30, %v1049_v27 }
 0x2d4   :  { %v563_v36 = vrot.slane %v537_v35, %v1049_v27 }
 0x2d6   :  { %v540_v31 = vpop.permute.xlu1 %539  ;;  %v588_v42 = vsel %vm440_vm3, %v563_v36, %v559_v37 }
 0x2d7   :  { %v567_v38 = vrot.slane %v540_v31, %v1049_v27 }
 0x2d9   :  { %v589_v44 = vsel %vm442_vm4, %v567_v38, %v588_v42 }
 0x2da   :  { %v543_v32 = vpop.permute.xlu1 %542 }
 0x2db   :  { %v571_v39 = vrot.slane %v543_v32, %v1049_v27 }
 0x2dd   :  { %v590_v46 = vsel %vm444_vm5, %v571_v39, %v589_v44 }
 0x2de   :  { %v546_v33 = vpop.permute.xlu1 %545 }
 0x2df   :  { %v575_v40 = vrot.slane %v546_v33, %v1049_v27 }
 0x2e1   :  { %v591_v47 = vsel %vm446_vm6, %v575_v40, %v590_v46 }
 0x2e2   :  { %v549_v23 = vpop.permute.xlu1 %548 }
 0x2e3   :  { %v579_v43 = vrot.slane %v549_v23, %v1049_v27 }
 0x2e5   :  { %v592_v49 = vsel %vm448_vm7, %v579_v43, %v591_v47 }
 0x2e6   :  { %v552_v41 = vpop.permute.xlu1 %551 }
 0x2e7   :  { %v583_v45 = vrot.slane %v552_v41, %v1049_v27 }
 0x2e9   :  { %v593_v54 = vsel %vm450_vm8, %v583_v45, %v592_v49 }
 0x2ea   :  { %v555_v48 = vpop.permute.xlu1 %554 }
 0x2eb   :  { %v587_v50 = vrot.slane %v555_v48, %v1049_v27 }
 0x2ed   :  { %v594_v55 = vsel %vm452_vm9, %v587_v50, %v593_v54 }
 0x2ee   :  { %v596_v56 = vsel %vm455_vm10, %v594_v55, 0.0 }
 0x2ef   :  { %597 = vadd.xlane.f32.xlu1 %v596_v56 }
 0x378   :  { %v598_v57 = vpop.xlane.xlu1 %597 }
 0x379   :  { %v603_v59 = vrot.slane %v598_v57, %v1034_v34  ;;  %v607_v60 = vrot.slane %v598_v57, %v466_v51  ;;  %v611_v61 = vrot.slane %v598_v57, %v470_v52  ;;  %v615_v62 = vrot.slane %v598_v57, %v474_v53 }
 0x37a   :  { %v619_v63 = vrot.slane %v598_v57, %v478_v58  ;;  %v623_v34 = vrot.slane %v598_v57, %v482_v1  ;;  %v627_v52 = vrot.slane %v598_v57, %v486_v5  ;;  %v631_v58 = vrot.slane %v598_v57, %v490_v9 }
 0x37b   :  { %846 = vrcp.f32 %v603_v59 }
 0x37c   :  { %848 = vrcp.f32 %v607_v60 }
 0x37d   :  { %850 = vrcp.f32 %v611_v61 }
 0x37e   :  { %852 = vrcp.f32 %v615_v62 }
 0x37f   :  { %854 = vrcp.f32 %v619_v63 }
 0x380   :  { %856 = vrcp.f32 %v623_v34 }
 0x381   :  { %858 = vrcp.f32 %v627_v52 }
 0x382   :  { %860 = vrcp.f32 %v631_v58 }
 0x388   :  { %v847_v0 = vpop.eup %846 }
 0x389   :  { %v641_v2 = vmul.f32 %v847_v0, %v831_v16  ;;  %v849_v51 = vpop.eup %848 }
 0x38a   :  { %v643_v3 = vmul.f32 %v849_v51, %v1089_v17  ;;  %v851_v53 = vpop.eup %850 }
 0x38b   :  { %665 = vperm.xlu0 %807, %v641_v2   ;;  %v645_v4 = vmul.f32 %v851_v53, %v1092_v20  ;;  %v853_v6 = vpop.eup %852 }
 0x38c   :  { %v647_v1 = vmul.f32 %v853_v6, %v1095_v22  ;;  %v855_v7 = vpop.eup %854 }
 0x38d   :  { %v649_v5 = vmul.f32 %v855_v7, %v1098_v24  ;;  %v857_v8 = vpop.eup %856 }
 0x38e   :  { %v651_v10 = vmul.f32 %v857_v8, %v1101_v26  ;;  %v859_v11 = vpop.eup %858 }
 0x38f   :  { %668 = vperm.xlu0 %807, %v643_v3   ;;  %v653_v25 = vmul.f32 %v859_v11, %v1104_v28  ;;  %v861_v9 = vpop.eup %860 }
 0x390   :  { %v655_v12 = vmul.f32 %v861_v9, %v1107_v29 }
 0x393   :  { %671 = vperm.xlu0 %807, %v645_v4  }
 0x397   :  { %674 = vperm.xlu0 %807, %v647_v1  }
 0x39b   :  { %677 = vperm.xlu0 %807, %v649_v5  }
 0x39f   :  { %680 = vperm.xlu0 %807, %v651_v10  }
 0x3a3   :  { %683 = vperm.xlu0 %807, %v653_v25  }
 0x3a7   :  { %686 = vperm.xlu0 %807, %v655_v12  }
 0x406   :  { %v666_v13 = vpop.permute.xlu0 %665 }
 0x407   :  { %v691_v21 = vrot.slane %v666_v13, %v1049_v27 }
 0x40a   :  { %v669_v14 = vpop.permute.xlu0 %668 }
 0x40b   :  { %v695_v19 = vrot.slane %v669_v14, %v1049_v27 }
 0x40d   :  { %v720_v28 = vsel %vm440_vm3, %v695_v19, %v691_v21 }
 0x40e   :  { %v672_v15 = vpop.permute.xlu0 %671 }
 0x40f   :  { %v699_v20 = vrot.slane %v672_v15, %v1049_v27 }
 0x411   :  { %v721_v30 = vsel %vm442_vm4, %v699_v20, %v720_v28 }
 0x412   :  { %v675_v16 = vpop.permute.xlu0 %674 }
 0x413   :  { %v703_v22 = vrot.slane %v675_v16, %v1049_v27 }
 0x415   :  { %v722_v32 = vsel %vm444_vm5, %v703_v22, %v721_v30 }
 0x416   :  { %v678_v17 = vpop.permute.xlu0 %677 }
 0x417   :  { %v707_v24 = vrot.slane %v678_v17, %v1049_v27 }
 0x419   :  { %v723_v33 = vsel %vm446_vm6, %v707_v24, %v722_v32 }
 0x41a   :  { %v681_v18 = vpop.permute.xlu0 %680 }
 0x41b   :  { %v711_v29 = vrot.slane %v681_v18, %v1049_v27 }
 0x41d   :  { %v724_v23 = vsel %vm448_vm7, %v711_v29, %v723_v33 }
 0x41e   :  { %v684_v26 = vpop.permute.xlu0 %683 }
 0x41f   :  { %v715_v31 = vrot.slane %v684_v26, %v1049_v27 }
 0x421   :  { %v725_v37 = vsel %vm450_vm8, %v715_v31, %v724_v23 }
 0x422   :  { %v687_v35 = vpop.permute.xlu0 %686 }
 0x423   :  { %v719_v36 = vrot.slane %v687_v35, %v1049_v27 }
 0x425   :  { %v726_v38 = vsel %vm452_vm9, %v719_v36, %v725_v37 }
 0x426   :  { %728 = vst.msk [vmem:[#allocation11] sm:$0xff] %vm455_vm10, %v726_v38 }
 0x427   :  { %953 = shalt.err (!%p950_p10)
}
 0x428   :  { %738 = dma.vmem_to_hbm [thread:$0]  %s736_s15, 128, %s1172_s5, [#allocation5]  }
 0x429   :  { %968 = dma.done.wait [#allocation5], 128  }
 0x42a   :  { %969 = vsyncadd [#allocation5], 4294967168 }
 0x42b   :  { %742 = vsyncpa [#allocation4], 1 }
 0x42c   :  { %743 = vsyncpa [#allocation7], 1 }
 0x42d   :  { %744 = vsyncpa [#allocation10], 1 }
 0x42e   :  { %745 = vsyncpa [#allocation5], 1 }

</bundles_post_ra>
